<compile_context>
chip_gen: v5e
topology: v5e:2x2
jax: 0.10.0
libtpu: 0.0.40
codegen_flags: <defaults>
</compile_context>

<pallas_src>
import functools

import jax
import jax.numpy as jnp
from jax.experimental import pallas as pl
from jax.experimental.pallas import tpu as pltpu


def _round_up(a, m):
    return ((a + m - 1) // m) * m


def _ceil8(a):
    return _round_up(a, 8)


# --------------------------------------------------------------------------- #
# Kernel
# --------------------------------------------------------------------------- #
def _complex_gv_kernel(xr_ref, xi_ref, wcr_ref, wci_ref, wv2_ref, wsg_ref,
                       bg_ref, out_real_ref, out_imag_ref, *,
                       n_actual, n_pad, out_scalar, out_vector, batch_block):
    # Ref shapes (one block = `batch_block` batch rows, N on the lane axis,
    # the three vector components stacked along lanes [d=0 | d=1 | d=2]):
    #   xr_ref, xi_ref : (Bb, C, 3*Np)   bf16   real / imag channel features
    #   wcr_ref        : (2H, C)         bf16   [ W_R ;  W_R]
    #   wci_ref        : (2H, C)         bf16   [-W_I ;  W_I]
    #   wv2_ref        : (OV, 2H)        f32    [0 | W_V2]  (imag half only)
    #   wsg_ref        : (OS+OV, 2H)     f32    [ws_fold ; wg @ ws_fold]
    #   bg_ref         : (OV, 1)         f32    gate bias
    #   out_real_ref   : (Bb, OS, Np)    f32
    #   out_imag_ref   : (Bb, 3*OV, Np)  f32    component-major rows
    wcr = wcr_ref[...]
    wci = wci_ref[...]
    wv2 = wv2_ref[...]
    wsg = wsg_ref[...]
    bg = bg_ref[...]
    OS, OV = out_scalar, out_vector
    inv_sqrt_os = OS ** (-0.5)

    def row(bi, carry):
        xr = xr_ref[bi]                                               # (C, 3Np)
        xi = xi_ref[bi]
        # Folded complex linear, all 3 components in one MXU pass per operand.
        # Rows 0..H-1 = hid_real, rows H..2H-1 = hid_imag.
        h = (jnp.dot(wcr, xr, preferred_element_type=jnp.float32) +
             jnp.dot(wci, xi, preferred_element_type=jnp.float32))    # (2H, 3Np)
        h0 = h[:, :n_pad]
        h1 = h[:, n_pad:2 * n_pad]
        h2 = h[:, 2 * n_pad:]
        # Per-channel L2 norm over the 3-vector: (2H, Np) = [norm_r ; norm_i].
        norm = jnp.sqrt(h0 * h0 + h1 * h1 + h2 * h2)
        # TODO(synk): the source does torch.cat([norm(imag), real_features], -1)
        # which is rank-inconsistent; we feed the per-channel L2 norms of both
        # halves instead (requires in_scalar == dim_hid).
        # One MXU pass -> out_real rows and pre-bias gate rows together.
        so = jnp.dot(wsg, norm, preferred_element_type=jnp.float32)   # (OS+OV, Np)
        out_real = so[:OS, :]
        out_real_ref[bi] = out_real
        # TODO(synk): apply_complex's cross terms lin_scalar(.) -/+ lin_vector2(.)
        # mix scalar- and vector-shaped tensors (ill-defined); both branches are
        # applied independently (GVLinear semantics).

        gates = (so[OS:, :] + bg) * inv_sqrt_os                       # (OV, Np)
        if n_actual != n_pad:   # mask padded lanes out of the softmax
            col = jax.lax.broadcasted_iota(jnp.int32, gates.shape, 1)
            gates = jnp.where(col < n_actual, gates, -1e30)
        # nn.Softmax(dim=1) == softmax over the sample axis N (= lanes here).
        gates = gates - jnp.max(gates, axis=-1, keepdims=True)
        e = jnp.exp(gates)
        gating = e / jnp.sum(e, axis=-1, keepdims=True)               # (OV, Np)

        v = jnp.dot(wv2, h, preferred_element_type=jnp.float32)       # (OV, 3Np)
        out_imag_ref[bi] = jnp.concatenate(
            [gating * v[:, :n_pad],
             gating * v[:, n_pad:2 * n_pad],
             gating * v[:, 2 * n_pad:]], axis=0)                      # (3OV, Np)
        return carry

    if batch_block <= 4:
        for bi in range(batch_block):   # short: static unroll (LLO visibility)
            row(bi, 0)
    else:
        jax.lax.fori_loop(0, batch_block, row, 0)   # bounded live ranges


# --------------------------------------------------------------------------- #
# Host-side weight folding (tiny, done once)
# --------------------------------------------------------------------------- #
def fold_params(params):
    wr_t, wi_t, wv2_t, ws_t, wg_t, b_g = params
    H = wr_t.shape[1]
    OV = wv2_t.shape[1]
    assert ws_t.shape[0] == 2 * H, "scalar path requires in_scalar == dim_hid"
    f32 = jnp.float32
    W_R = wr_t.T.astype(f32)                                      # (H, C)
    W_I = wi_t.T.astype(f32)                                      # (H, C)
    wcr = jnp.concatenate([W_R, W_R], axis=0).astype(jnp.bfloat16)    # (2H, C)
    wci = jnp.concatenate([-W_I, W_I], axis=0).astype(jnp.bfloat16)   # (2H, C)
    W_V2 = wv2_t.T.astype(f32)                                    # (OV, H)
    wv2_pad = jnp.concatenate([jnp.zeros_like(W_V2), W_V2], axis=1)   # (OV, 2H)
    W_S = ws_t.T.astype(f32)                                      # (OS, 2H)
    # cols re-ordered so stacked [norm_r ; norm_i] matches cat([norm_i, norm_r])
    ws_fold = jnp.concatenate([W_S[:, H:], W_S[:, :H]], axis=1)   # (OS, 2H)
    W_G = wg_t.T.astype(f32)                                      # (OV, OS)
    wsg = jnp.concatenate([ws_fold, W_G @ ws_fold], axis=0)       # (OS+OV, 2H)
    bg = b_g.reshape(OV, 1).astype(f32)
    return wcr, wci, wv2_pad, wsg, bg


# --------------------------------------------------------------------------- #
# Block-size / VMEM policy (generation-aware, defensive)
# --------------------------------------------------------------------------- #
def _pick_block(B, C, H2, OS, OV, n_pad, batch_block):
    try:
        info = pltpu.get_tpu_info()
        vmem_cap = int(getattr(info, "vmem_capacity_bytes", 64 << 20))
    except Exception:
        vmem_cap = 64 << 20
    try:
        dk = jax.devices()[0].device_kind.lower()
    except Exception:
        dk = ""
    multi_tc = any(t in dk for t in ("v7", "v5p", "v4"))   # 2 TensorCores/chip
    vmem_limit = int(min(vmem_cap * 3 // 4, 100 << 20))
    if "v7" in dk:
        vmem_limit = min(vmem_limit, 44 << 20)   # 64 MiB/TC on v7x: leave headroom
    # >=2 grid steps per core on multi-TC parts; no artificial minimum otherwise.
    min_grid = min(B, 4) if multi_tc else 1

    # Double-buffered I/O blocks per batch row.
    in_bytes = 2 * _ceil8(C) * 3 * n_pad * 2                       # xr + xi, bf16
    out_bytes = (_ceil8(OS) + _ceil8(3 * OV)) * n_pad * 4
    per_row_io = in_bytes + out_bytes
    # Kernel-internal f32 temporaries per live row (generous).
    tmp_rows = (3 * H2 + 2 * H2 + H2 + _ceil8(OS + OV)
                + 6 * _ceil8(OV) + _ceil8(3 * OV))
    per_row_tmp = 4 * n_pad * tmp_rows

    budget = vmem_limit - 2 * per_row_tmp - (2 << 20)   # weights + margin
    max_bb = max(1, budget // (2 * per_row_io))         # x2: double buffering

    if batch_block is None:
        bb = 1
        for cand in range(1, B + 1):
            if B % cand == 0 and cand <= max_bb and (B // cand) >= min_grid:
                bb = cand
        batch_block = bb
    assert B % batch_block == 0
    return batch_block, vmem_limit


# --------------------------------------------------------------------------- #
# Kernel-native entry point (no layout shims)
# --------------------------------------------------------------------------- #
def complex_gv_linear_packed(xr_p, xi_p, folded, *, n_actual, batch_block=None):
    """xr_p, xi_p: (B, C, 3*N_pad) bf16, N_pad % 128 == 0, vector components
    stacked along lanes ([d=0 | d=1 | d=2], each width N_pad).
    Returns (out_real (B, OS, N_pad) f32, out_imag (B, 3*OV, N_pad) f32)."""
    wcr, wci, wv2_pad, wsg, bg = folded
    B, C, threeN = xr_p.shape
    n_pad = threeN // 3
    assert n_pad % 128 == 0 and 3 * n_pad == threeN
    H2 = wcr.shape[0]
    OV = wv2_pad.shape[0]
    OS = wsg.shape[0] - OV

    bb, vmem_limit = _pick_block(B, C, H2, OS, OV, n_pad, batch_block)
    grid = (B // bb,)

    kernel = functools.partial(_complex_gv_kernel, n_actual=n_actual,
                               n_pad=n_pad, out_scalar=OS, out_vector=OV,
                               batch_block=bb)
    return pl.pallas_call(
        kernel,
        out_shape=(jax.ShapeDtypeStruct((B, OS, n_pad), jnp.float32),
                   jax.ShapeDtypeStruct((B, 3 * OV, n_pad), jnp.float32)),
        grid=grid,
        in_specs=[
            pl.BlockSpec((bb, C, 3 * n_pad), lambda b: (b, 0, 0)),
            pl.BlockSpec((bb, C, 3 * n_pad), lambda b: (b, 0, 0)),
            pl.BlockSpec((H2, C), lambda b: (0, 0)),
            pl.BlockSpec((H2, C), lambda b: (0, 0)),
            pl.BlockSpec((OV, H2), lambda b: (0, 0)),
            pl.BlockSpec((OS + OV, H2), lambda b: (0, 0)),
            pl.BlockSpec((OV, 1), lambda b: (0, 0)),
        ],
        out_specs=(pl.BlockSpec((bb, OS, n_pad), lambda b: (b, 0, 0)),
                   pl.BlockSpec((bb, 3 * OV, n_pad), lambda b: (b, 0, 0))),
        compiler_params=pltpu.CompilerParams(
            dimension_semantics=("parallel",),
            vmem_limit_bytes=int(vmem_limit)),
    )(xr_p, xi_p, wcr, wci, wv2_pad, wsg, bg)


# --------------------------------------------------------------------------- #
# PyTorch-layout compatibility shim (single fused layout op per tensor)
# --------------------------------------------------------------------------- #
def _pack(x, n_pad):
    # (B, N, C, 3) f32 -> (B, C, 3*N_pad) bf16 in one fused transpose+cast+pad.
    B, N, C, _ = x.shape
    xt = jnp.transpose(x, (0, 2, 3, 1)).astype(jnp.bfloat16)   # (B, C, 3, N)
    if n_pad != N:
        xt = jnp.pad(xt, ((0, 0), (0, 0), (0, 0), (0, n_pad - N)))
    return xt.reshape(B, C, 3 * n_pad)


def complex_gv_linear(x_real, x_imag, params, *, batch_block=None):
    """x_real, x_imag: (B, N, in_vector, 3) float32 (PyTorch layout)."""
    B, N, C, V = x_real.shape
    assert V == 3
    n_pad = _round_up(N, 128)
    folded = fold_params(params)
    xr_p = _pack(x_real, n_pad)
    xi_p = _pack(x_imag, n_pad)
    o_r, o_i = complex_gv_linear_packed(xr_p, xi_p, folded, n_actual=N,
                                        batch_block=batch_block)
    OV = folded[2].shape[0]
    out_real = jnp.transpose(o_r[:, :, :N], (0, 2, 1))                # (B, N, OS)
    out_imag = jnp.transpose(o_i.reshape(B, 3, OV, n_pad)[..., :N],
                             (0, 3, 2, 1))                            # (B, N, OV, 3)
    return out_real, out_imag


# --------------------------------------------------------------------------- #
# Params / reference
# --------------------------------------------------------------------------- #
def init_params(key, in_scalar, in_vector, out_scalar, out_vector):
    """Deterministic init; shapes match the nn.Linear weights in __init__."""
    dim_hid = max(in_vector, out_vector)
    assert in_scalar == dim_hid, "scalar path requires in_scalar == dim_hid (see TODO)"
    ks = jax.random.split(key, 6)

    def lin(k, out_f, in_f):
        bound = 1.0 / (in_f ** 0.5)
        return jax.random.uniform(k, (out_f, in_f), jnp.float32, -bound, bound)

    W_R = lin(ks[0], dim_hid, in_vector)                 # linear.FC_R.weight
    W_I = lin(ks[1], dim_hid, in_vector)                 # linear.FC_I.map_to_feat.weight
    W_V2 = lin(ks[2], out_vector, dim_hid)               # lin_vector2.map_to_feat.weight
    W_S = lin(ks[3], out_scalar, in_scalar + dim_hid)    # lin_scalar.weight
    W_G = lin(ks[4], out_vector, out_scalar)             # scalar_to_vector_gates.weight
    b_G = jax.random.uniform(ks[5], (out_vector,), jnp.float32,
                             -1.0 / (out_scalar ** 0.5), 1.0 / (out_scalar ** 0.5))
    # (in_features, out_features) orientation, as consumed by reference/wrapper.
    return (W_R.T, W_I.T, W_V2.T, W_S.T, W_G.T, b_G)


def reference(x_real, x_imag, params):
    """Pure-JAX reference with the same (documented) semantics."""
    wr_t, wi_t, wv2_t, ws_t, wg_t, b_g = params
    OS = ws_t.shape[1]
    ar = jnp.einsum('bncd,ch->bnhd', x_real, wr_t)
    ai = jnp.einsum('bncd,ch->bnhd', x_imag, wi_t)
    hid_r = ar - ai
    hid_i = ar + ai
    norm_i = jnp.linalg.norm(hid_i, axis=-1)
    norm_r = jnp.linalg.norm(hid_r, axis=-1)
    cat = jnp.concatenate([norm_i, norm_r], axis=-1)
    out_real = cat @ ws_t
    out_v = jnp.einsum('bnhd,hv->bnvd', hid_i, wv2_t)
    gates = out_real @ wg_t + b_g
    gating = jax.nn.softmax(gates * (OS ** -0.5), axis=1)[..., None]
    out_imag = gating * out_v
    return out_real, out_imag


if __name__ == "__main__":
    B, N = 2, 16
    in_vector, out_vector = 8, 4
    dim_hid = max(in_vector, out_vector)
    in_scalar, out_scalar = dim_hid, 8

    key = jax.random.PRNGKey(0)
    kx, kp = jax.random.split(key)
    k1, k2 = jax.random.split(kx)
    x_real = jax.random.normal(k1, (B, N, in_vector, 3), jnp.float32)
    x_imag = jax.random.normal(k2, (B, N, in_vector, 3), jnp.float32)

    params = init_params(kp, in_scalar, in_vector, out_scalar, out_vector)

    out_real, out_imag = complex_gv_linear(x_real, x_imag, params)
    jax.block_until_ready((out_real, out_imag))

    # The kernel carries activations (and the first-layer weights) as bf16 in
    # HBM; the reference therefore sees the same bf16-rounded values (all math
    # after that is f32 on both sides).
    def rb(a):
        return a.astype(jnp.bfloat16).astype(jnp.float32)

    wr_t, wi_t, wv2_t, ws_t, wg_t, b_g = params
    ref_real, ref_imag = reference(rb(x_real), rb(x_imag),
                                   (rb(wr_t), rb(wi_t), wv2_t, ws_t, wg_t, b_g))

    assert out_real.shape == (B, N, out_scalar)
    assert out_imag.shape == (B, N, out_vector, 3)
    assert jnp.allclose(out_real, ref_real, atol=2e-3, rtol=2e-3)
    assert jnp.allclose(out_imag, ref_imag, atol=2e-3, rtol=2e-3)
    print("KERNEL_OK")
</pallas_src>

<mosaic_0001>
module attributes {stable_mosaic.version = 11 : i64} {
  func.func @_complex_gv_kernel(%arg0: i32, %arg1: memref<2x8x384xbf16, #tpu.memory_space<vmem>>, %arg2: memref<2x8x384xbf16, #tpu.memory_space<vmem>>, %arg3: memref<16x8xbf16, #tpu.memory_space<vmem>>, %arg4: memref<16x8xbf16, #tpu.memory_space<vmem>>, %arg5: memref<4x16xf32, #tpu.memory_space<vmem>>, %arg6: memref<12x16xf32, #tpu.memory_space<vmem>>, %arg7: memref<4x1xf32, #tpu.memory_space<vmem>>, %arg8: memref<2x8x128xf32, #tpu.memory_space<vmem>>, %arg9: memref<2x12x128xf32, #tpu.memory_space<vmem>>) attributes {dimension_semantics = [#tpu.dimension_semantics<parallel>], iteration_bounds = array<i64: 1>, scalar_prefetch = 0 : i64, scratch_operands = 0 : i64, tpu.core_type = #tpu.core_type<tc>, window_params = [{transform_indices = @transform_0, window_bounds = array<i64: 2, 8, 384>}, {transform_indices = @transform_1, window_bounds = array<i64: 2, 8, 384>}, {pipeline_mode = #tpu.pipeline_mode<synchronous>, transform_indices = @transform_2, window_bounds = array<i64: 16, 8>}, {pipeline_mode = #tpu.pipeline_mode<synchronous>, transform_indices = @transform_3, window_bounds = array<i64: 16, 8>}, {pipeline_mode = #tpu.pipeline_mode<synchronous>, transform_indices = @transform_4, window_bounds = array<i64: 4, 16>}, {pipeline_mode = #tpu.pipeline_mode<synchronous>, transform_indices = @transform_5, window_bounds = array<i64: 12, 16>}, {pipeline_mode = #tpu.pipeline_mode<synchronous>, transform_indices = @transform_6, window_bounds = array<i64: 4, 1>}, {transform_indices = @transform_7, window_bounds = array<i64: 2, 8, 128>}, {transform_indices = @transform_8, window_bounds = array<i64: 2, 12, 128>}]} {
    %c0 = arith.constant 0 : index
    %c0_0 = arith.constant 0 : index
    %0 = vector.load %arg3[%c0, %c0_0] : memref<16x8xbf16, #tpu.memory_space<vmem>>, vector<16x8xbf16>
    %c0_1 = arith.constant 0 : index
    %c0_2 = arith.constant 0 : index
    %1 = vector.load %arg4[%c0_1, %c0_2] : memref<16x8xbf16, #tpu.memory_space<vmem>>, vector<16x8xbf16>
    %c0_3 = arith.constant 0 : index
    %c0_4 = arith.constant 0 : index
    %2 = vector.load %arg5[%c0_3, %c0_4] : memref<4x16xf32, #tpu.memory_space<vmem>>, vector<4x16xf32>
    %c0_5 = arith.constant 0 : index
    %c0_6 = arith.constant 0 : index
    %3 = vector.load %arg6[%c0_5, %c0_6] : memref<12x16xf32, #tpu.memory_space<vmem>>, vector<12x16xf32>
    %c0_7 = arith.constant 0 : index
    %c0_8 = arith.constant 0 : index
    %4 = vector.load %arg7[%c0_7, %c0_8] : memref<4x1xf32, #tpu.memory_space<vmem>>, vector<4x1xf32>
    %c0_9 = arith.constant 0 : index
    %c0_10 = arith.constant 0 : index
    %c0_11 = arith.constant 0 : index
    %5 = vector.load %arg1[%c0_9, %c0_10, %c0_11] : memref<2x8x384xbf16, #tpu.memory_space<vmem>>, vector<1x8x384xbf16>
    %6 = vector.shape_cast %5 : vector<1x8x384xbf16> to vector<8x384xbf16>
    %c0_12 = arith.constant 0 : index
    %c0_13 = arith.constant 0 : index
    %c0_14 = arith.constant 0 : index
    %7 = vector.load %arg2[%c0_12, %c0_13, %c0_14] : memref<2x8x384xbf16, #tpu.memory_space<vmem>>, vector<1x8x384xbf16>
    %8 = vector.shape_cast %7 : vector<1x8x384xbf16> to vector<8x384xbf16>
    %cst = arith.constant dense<0.000000e+00> : vector<16x384xf32>
    %9 = tpu.matmul %0, %6, %cst {dimension_numbers = #tpu.dot_dimension_numbers<[1], [0], [0], [1], [0, 0, 1, 1], [], []>} : vector<16x8xbf16>, vector<8x384xbf16>, vector<16x384xf32> -> vector<16x384xf32>
    %cst_15 = arith.constant dense<0.000000e+00> : vector<16x384xf32>
    %10 = tpu.matmul %1, %8, %cst_15 {dimension_numbers = #tpu.dot_dimension_numbers<[1], [0], [0], [1], [0, 0, 1, 1], [], []>} : vector<16x8xbf16>, vector<8x384xbf16>, vector<16x384xf32> -> vector<16x384xf32>
    %11 = arith.addf %9, %10 : vector<16x384xf32>
    %12 = vector.extract_strided_slice %11 {offsets = [0, 0], sizes = [16, 128], strides = [1, 1]} : vector<16x384xf32> to vector<16x128xf32>
    %13 = vector.extract_strided_slice %11 {offsets = [0, 128], sizes = [16, 128], strides = [1, 1]} : vector<16x384xf32> to vector<16x128xf32>
    %14 = vector.extract_strided_slice %11 {offsets = [0, 256], sizes = [16, 128], strides = [1, 1]} : vector<16x384xf32> to vector<16x128xf32>
    %15 = arith.mulf %12, %12 : vector<16x128xf32>
    %16 = arith.mulf %13, %13 : vector<16x128xf32>
    %17 = arith.addf %15, %16 : vector<16x128xf32>
    %18 = arith.mulf %14, %14 : vector<16x128xf32>
    %19 = arith.addf %17, %18 : vector<16x128xf32>
    %20 = math.sqrt %19 : vector<16x128xf32>
    %cst_16 = arith.constant dense<0.000000e+00> : vector<12x128xf32>
    %21 = tpu.matmul %3, %20, %cst_16 {dimension_numbers = #tpu.dot_dimension_numbers<[1], [0], [0], [1], [0, 0, 1, 1], [], []>} : vector<12x16xf32>, vector<16x128xf32>, vector<12x128xf32> -> vector<12x128xf32>
    %22 = vector.extract_strided_slice %21 {offsets = [0, 0], sizes = [8, 128], strides = [1, 1]} : vector<12x128xf32> to vector<8x128xf32>
    %c0_17 = arith.constant 0 : index
    %c0_18 = arith.constant 0 : index
    %c0_19 = arith.constant 0 : index
    %23 = vector.load %arg8[%c0_17, %c0_18, %c0_19] : memref<2x8x128xf32, #tpu.memory_space<vmem>>, vector<1x8x128xf32>
    %24 = vector.shape_cast %23 : vector<1x8x128xf32> to vector<8x128xf32>
    %25 = vector.shape_cast %22 : vector<8x128xf32> to vector<1x8x128xf32>
    tpu.vector_store %arg8[%c0_17, %c0_18, %c0_19], %25 {strides = array<i32>} : memref<2x8x128xf32, #tpu.memory_space<vmem>>, vector<1x8x128xf32>,
    %26 = vector.extract_strided_slice %21 {offsets = [8, 0], sizes = [4, 128], strides = [1, 1]} : vector<12x128xf32> to vector<4x128xf32>
    %27 = vector.broadcast %4 : vector<4x1xf32> to vector<4x128xf32>
    %28 = arith.addf %26, %27 : vector<4x128xf32>
    %cst_20 = arith.constant 0.353553385 : f32
    %29 = vector.broadcast %cst_20 : f32 to vector<4x128xf32>
    %30 = arith.mulf %28, %29 : vector<4x128xf32>
    %31 = tpu.iota {dimensions = array<i32: 1>} : vector<4x128xi32>
    %c16_i32 = arith.constant 16 : i32
    %32 = vector.broadcast %c16_i32 : i32 to vector<4x128xi32>
    %33 = arith.cmpi slt, %31, %32 : vector<4x128xi32>
    %cst_21 = arith.constant -1.000000e+30 : f32
    %34 = vector.broadcast %cst_21 : f32 to vector<4x128xf32>
    %35 = arith.select %33, %30, %34 : vector<4x128xi1>, vector<4x128xf32>
    %cst_22 = arith.constant dense<0xFF800000> : vector<4xf32>
    %36 = vector.multi_reduction <maximumf>, %35, %cst_22 [1] : vector<4x128xf32> to vector<4xf32>
    %37 = vector.shape_cast %36 : vector<4xf32> to vector<4x1xf32>
    %38 = vector.broadcast %37 : vector<4x1xf32> to vector<4x128xf32>
    %39 = arith.subf %35, %38 : vector<4x128xf32>
    %40 = math.exp %39 : vector<4x128xf32>
    %cst_23 = arith.constant dense<0.000000e+00> : vector<4xf32>
    %41 = vector.multi_reduction <add>, %40, %cst_23 [1] : vector<4x128xf32> to vector<4xf32>
    %42 = vector.shape_cast %41 : vector<4xf32> to vector<4x1xf32>
    %43 = vector.broadcast %42 : vector<4x1xf32> to vector<4x128xf32>
    %44 = arith.divf %40, %43 : vector<4x128xf32>
    %cst_24 = arith.constant dense<0.000000e+00> : vector<4x384xf32>
    %45 = tpu.matmul %2, %11, %cst_24 {dimension_numbers = #tpu.dot_dimension_numbers<[1], [0], [0], [1], [0, 0, 1, 1], [], []>} : vector<4x16xf32>, vector<16x384xf32>, vector<4x384xf32> -> vector<4x384xf32>
    %46 = vector.extract_strided_slice %45 {offsets = [0, 0], sizes = [4, 128], strides = [1, 1]} : vector<4x384xf32> to vector<4x128xf32>
    %47 = arith.mulf %44, %46 : vector<4x128xf32>
    %48 = vector.extract_strided_slice %45 {offsets = [0, 128], sizes = [4, 128], strides = [1, 1]} : vector<4x384xf32> to vector<4x128xf32>
    %49 = arith.mulf %44, %48 : vector<4x128xf32>
    %50 = vector.extract_strided_slice %45 {offsets = [0, 256], sizes = [4, 128], strides = [1, 1]} : vector<4x384xf32> to vector<4x128xf32>
    %51 = arith.mulf %44, %50 : vector<4x128xf32>
    %52 = tpu.concatenate %47, %49, %51 in 0 : vector<4x128xf32>, vector<4x128xf32>, vector<4x128xf32> -> vector<12x128xf32>
    %c0_25 = arith.constant 0 : index
    %c0_26 = arith.constant 0 : index
    %c0_27 = arith.constant 0 : index
    %53 = vector.load %arg9[%c0_25, %c0_26, %c0_27] : memref<2x12x128xf32, #tpu.memory_space<vmem>>, vector<1x12x128xf32>
    %54 = vector.shape_cast %53 : vector<1x12x128xf32> to vector<12x128xf32>
    %55 = vector.shape_cast %52 : vector<12x128xf32> to vector<1x12x128xf32>
    tpu.vector_store %arg9[%c0_25, %c0_26, %c0_27], %55 {strides = array<i32>} : memref<2x12x128xf32, #tpu.memory_space<vmem>>, vector<1x12x128xf32>,
    %c1 = arith.constant 1 : index
    %c0_28 = arith.constant 0 : index
    %c0_29 = arith.constant 0 : index
    %56 = vector.load %arg1[%c1, %c0_28, %c0_29] : memref<2x8x384xbf16, #tpu.memory_space<vmem>>, vector<1x8x384xbf16>
    %57 = vector.shape_cast %56 : vector<1x8x384xbf16> to vector<8x384xbf16>
    %c1_30 = arith.constant 1 : index
    %c0_31 = arith.constant 0 : index
    %c0_32 = arith.constant 0 : index
    %58 = vector.load %arg2[%c1_30, %c0_31, %c0_32] : memref<2x8x384xbf16, #tpu.memory_space<vmem>>, vector<1x8x384xbf16>
    %59 = vector.shape_cast %58 : vector<1x8x384xbf16> to vector<8x384xbf16>
    %cst_33 = arith.constant dense<0.000000e+00> : vector<16x384xf32>
    %60 = tpu.matmul %0, %57, %cst_33 {dimension_numbers = #tpu.dot_dimension_numbers<[1], [0], [0], [1], [0, 0, 1, 1], [], []>} : vector<16x8xbf16>, vector<8x384xbf16>, vector<16x384xf32> -> vector<16x384xf32>
    %cst_34 = arith.constant dense<0.000000e+00> : vector<16x384xf32>
    %61 = tpu.matmul %1, %59, %cst_34 {dimension_numbers = #tpu.dot_dimension_numbers<[1], [0], [0], [1], [0, 0, 1, 1], [], []>} : vector<16x8xbf16>, vector<8x384xbf16>, vector<16x384xf32> -> vector<16x384xf32>
    %62 = arith.addf %60, %61 : vector<16x384xf32>
    %63 = vector.extract_strided_slice %62 {offsets = [0, 0], sizes = [16, 128], strides = [1, 1]} : vector<16x384xf32> to vector<16x128xf32>
    %64 = vector.extract_strided_slice %62 {offsets = [0, 128], sizes = [16, 128], strides = [1, 1]} : vector<16x384xf32> to vector<16x128xf32>
    %65 = vector.extract_strided_slice %62 {offsets = [0, 256], sizes = [16, 128], strides = [1, 1]} : vector<16x384xf32> to vector<16x128xf32>
    %66 = arith.mulf %63, %63 : vector<16x128xf32>
    %67 = arith.mulf %64, %64 : vector<16x128xf32>
    %68 = arith.addf %66, %67 : vector<16x128xf32>
    %69 = arith.mulf %65, %65 : vector<16x128xf32>
    %70 = arith.addf %68, %69 : vector<16x128xf32>
    %71 = math.sqrt %70 : vector<16x128xf32>
    %cst_35 = arith.constant dense<0.000000e+00> : vector<12x128xf32>
    %72 = tpu.matmul %3, %71, %cst_35 {dimension_numbers = #tpu.dot_dimension_numbers<[1], [0], [0], [1], [0, 0, 1, 1], [], []>} : vector<12x16xf32>, vector<16x128xf32>, vector<12x128xf32> -> vector<12x128xf32>
    %73 = vector.extract_strided_slice %72 {offsets = [0, 0], sizes = [8, 128], strides = [1, 1]} : vector<12x128xf32> to vector<8x128xf32>
    %c1_36 = arith.constant 1 : index
    %c0_37 = arith.constant 0 : index
    %c0_38 = arith.constant 0 : index
    %74 = vector.load %arg8[%c1_36, %c0_37, %c0_38] : memref<2x8x128xf32, #tpu.memory_space<vmem>>, vector<1x8x128xf32>
    %75 = vector.shape_cast %74 : vector<1x8x128xf32> to vector<8x128xf32>
    %76 = vector.shape_cast %73 : vector<8x128xf32> to vector<1x8x128xf32>
    tpu.vector_store %arg8[%c1_36, %c0_37, %c0_38], %76 {strides = array<i32>} : memref<2x8x128xf32, #tpu.memory_space<vmem>>, vector<1x8x128xf32>,
    %77 = vector.extract_strided_slice %72 {offsets = [8, 0], sizes = [4, 128], strides = [1, 1]} : vector<12x128xf32> to vector<4x128xf32>
    %78 = vector.broadcast %4 : vector<4x1xf32> to vector<4x128xf32>
    %79 = arith.addf %77, %78 : vector<4x128xf32>
    %cst_39 = arith.constant 0.353553385 : f32
    %80 = vector.broadcast %cst_39 : f32 to vector<4x128xf32>
    %81 = arith.mulf %79, %80 : vector<4x128xf32>
    %82 = tpu.iota {dimensions = array<i32: 1>} : vector<4x128xi32>
    %c16_i32_40 = arith.constant 16 : i32
    %83 = vector.broadcast %c16_i32_40 : i32 to vector<4x128xi32>
    %84 = arith.cmpi slt, %82, %83 : vector<4x128xi32>
    %cst_41 = arith.constant -1.000000e+30 : f32
    %85 = vector.broadcast %cst_41 : f32 to vector<4x128xf32>
    %86 = arith.select %84, %81, %85 : vector<4x128xi1>, vector<4x128xf32>
    %cst_42 = arith.constant dense<0xFF800000> : vector<4xf32>
    %87 = vector.multi_reduction <maximumf>, %86, %cst_42 [1] : vector<4x128xf32> to vector<4xf32>
    %88 = vector.shape_cast %87 : vector<4xf32> to vector<4x1xf32>
    %89 = vector.broadcast %88 : vector<4x1xf32> to vector<4x128xf32>
    %90 = arith.subf %86, %89 : vector<4x128xf32>
    %91 = math.exp %90 : vector<4x128xf32>
    %cst_43 = arith.constant dense<0.000000e+00> : vector<4xf32>
    %92 = vector.multi_reduction <add>, %91, %cst_43 [1] : vector<4x128xf32> to vector<4xf32>
    %93 = vector.shape_cast %92 : vector<4xf32> to vector<4x1xf32>
    %94 = vector.broadcast %93 : vector<4x1xf32> to vector<4x128xf32>
    %95 = arith.divf %91, %94 : vector<4x128xf32>
    %cst_44 = arith.constant dense<0.000000e+00> : vector<4x384xf32>
    %96 = tpu.matmul %2, %62, %cst_44 {dimension_numbers = #tpu.dot_dimension_numbers<[1], [0], [0], [1], [0, 0, 1, 1], [], []>} : vector<4x16xf32>, vector<16x384xf32>, vector<4x384xf32> -> vector<4x384xf32>
    %97 = vector.extract_strided_slice %96 {offsets = [0, 0], sizes = [4, 128], strides = [1, 1]} : vector<4x384xf32> to vector<4x128xf32>
    %98 = arith.mulf %95, %97 : vector<4x128xf32>
    %99 = vector.extract_strided_slice %96 {offsets = [0, 128], sizes = [4, 128], strides = [1, 1]} : vector<4x384xf32> to vector<4x128xf32>
    %100 = arith.mulf %95, %99 : vector<4x128xf32>
    %101 = vector.extract_strided_slice %96 {offsets = [0, 256], sizes = [4, 128], strides = [1, 1]} : vector<4x384xf32> to vector<4x128xf32>
    %102 = arith.mulf %95, %101 : vector<4x128xf32>
    %103 = tpu.concatenate %98, %100, %102 in 0 : vector<4x128xf32>, vector<4x128xf32>, vector<4x128xf32> -> vector<12x128xf32>
    %c1_45 = arith.constant 1 : index
    %c0_46 = arith.constant 0 : index
    %c0_47 = arith.constant 0 : index
    %104 = vector.load %arg9[%c1_45, %c0_46, %c0_47] : memref<2x12x128xf32, #tpu.memory_space<vmem>>, vector<1x12x128xf32>
    %105 = vector.shape_cast %104 : vector<1x12x128xf32> to vector<12x128xf32>
    %106 = vector.shape_cast %103 : vector<12x128xf32> to vector<1x12x128xf32>
    tpu.vector_store %arg9[%c1_45, %c0_46, %c0_47], %106 {strides = array<i32>} : memref<2x12x128xf32, #tpu.memory_space<vmem>>, vector<1x12x128xf32>,
    return
  }
  func.func @transform_0(%arg0: i32) -> (i32, i32, i32) {
    %c0_i32 = arith.constant 0 : i32
    %c0_i32_0 = arith.constant 0 : i32
    %c0_i32_1 = arith.constant 0 : i32
    return %arg0, %c0_i32, %c0_i32_0 : i32, i32, i32
  }
  func.func @transform_1(%arg0: i32) -> (i32, i32, i32) {
    %c0_i32 = arith.constant 0 : i32
    %c0_i32_0 = arith.constant 0 : i32
    %c0_i32_1 = arith.constant 0 : i32
    return %arg0, %c0_i32, %c0_i32_0 : i32, i32, i32
  }
  func.func @transform_2(%arg0: i32) -> (i32, i32) {
    %c0_i32 = arith.constant 0 : i32
    %c0_i32_0 = arith.constant 0 : i32
    %c0_i32_1 = arith.constant 0 : i32
    return %c0_i32, %c0_i32_0 : i32, i32
  }
  func.func @transform_3(%arg0: i32) -> (i32, i32) {
    %c0_i32 = arith.constant 0 : i32
    %c0_i32_0 = arith.constant 0 : i32
    %c0_i32_1 = arith.constant 0 : i32
    return %c0_i32, %c0_i32_0 : i32, i32
  }
  func.func @transform_4(%arg0: i32) -> (i32, i32) {
    %c0_i32 = arith.constant 0 : i32
    %c0_i32_0 = arith.constant 0 : i32
    %c0_i32_1 = arith.constant 0 : i32
    return %c0_i32, %c0_i32_0 : i32, i32
  }
  func.func @transform_5(%arg0: i32) -> (i32, i32) {
    %c0_i32 = arith.constant 0 : i32
    %c0_i32_0 = arith.constant 0 : i32
    %c0_i32_1 = arith.constant 0 : i32
    return %c0_i32, %c0_i32_0 : i32, i32
  }
  func.func @transform_6(%arg0: i32) -> (i32, i32) {
    %c0_i32 = arith.constant 0 : i32
    %c0_i32_0 = arith.constant 0 : i32
    %c0_i32_1 = arith.constant 0 : i32
    return %c0_i32, %c0_i32_0 : i32, i32
  }
  func.func @transform_7(%arg0: i32) -> (i32, i32, i32) {
    %c0_i32 = arith.constant 0 : i32
    %c0_i32_0 = arith.constant 0 : i32
    %c0_i32_1 = arith.constant 0 : i32
    return %arg0, %c0_i32, %c0_i32_0 : i32, i32, i32
  }
  func.func @transform_8(%arg0: i32) -> (i32, i32, i32) {
    %c0_i32 = arith.constant 0 : i32
    %c0_i32_0 = arith.constant 0 : i32
    %c0_i32_1 = arith.constant 0 : i32
    return %arg0, %c0_i32, %c0_i32_0 : i32, i32, i32
  }
}

</mosaic_0001>

<bundles_post_ra>
// kernel: tpu_custom_call.1
= control target key start
LH: loop header
LB: loop body
LE: loop exit
PB: predicated region body
PF: predicated region fallthrough
CT: control target
= control target key end

     0   :  { %14 = vsyncpa [#allocation3], 0  ;;  %s1024_s0 = inlined_call_operand.hbm [shape: bf16[2,8,384], index: 0, kind: input, shape index: {}]   ;;  %s1025_s1 = inlined_call_operand.hbm [shape: bf16[2,8,384], index: 1, kind: input, shape index: {}]   ;;  %s1026_s2 = inlined_call_operand.vmem [shape: bf16[16,8], index: 2, kind: input, shape index: {}]   ;;  %s1027_s3 = inlined_call_operand.vmem [shape: bf16[16,8], index: 3, kind: input, shape index: {}]   ;;  %s1028_s4 = inlined_call_operand.vmem [shape: f32[4,16], index: 4, kind: input, shape index: {}]   ;;  %s1029_s5 = inlined_call_operand.vmem [shape: f32[12,16], index: 5, kind: input, shape index: {}]   ;;  %s1030_s6 = inlined_call_operand.vmem [shape: f32[4,1], index: 6, kind: input, shape index: {}]   ;;  %s1031_s7 = inlined_call_operand.hbm [shape: f32[2,8,128], index: 7, kind: output, shape index: {0}]   ;;  %s1032_s8 = inlined_call_operand.vmem [shape: f32[2,12,128], index: 8, kind: output, shape index: {1}]  }
   0x1   :  { %15 = vsyncpa [#allocation6], 0 }
   0x2   :  { %16 = vsyncpa [#allocation4], 0  ;;  %s21_s29 = sshll.u32 %s1024_s0, 4  ;;  %s823_s30 = smov [#allocation2]   ;;  %s22_s29 = int_to_ptr.hbm [resolvable:$true] %s21_s29 }
   0x3   :  { %s23_s9 = sshll.u32 %s823_s30, 4  ;;  %s34_s12 = sshll.u32 %s1025_s1, 4  ;;  %s24_s9 = int_to_ptr.vmem [resolvable:$true] %s23_s9  ;;  %s35_s12 = int_to_ptr.hbm [resolvable:$true] %s34_s12 }
   0x4   :  { %s824_s13 = smov 192   ;;  %s825_s14 = smov 12  }
   0x5   :  { %29 = dma.hbm_to_vmem [thread:$0]  %s22_s29, 384, %s24_s9, [#allocation3], %s824_s13, %s824_s13, %s825_s14  }
   0x6   :  { %s826_s15 = smov [#allocation5]  }
   0x7   :  { %s36_s16 = sshll.u32 %s826_s15, 4  ;;  %s37_s16 = int_to_ptr.vmem [resolvable:$true] %s36_s16 }
   0x8   :  { %42 = dma.hbm_to_vmem [thread:$0]  %s35_s12, 384, %s37_s16, [#allocation6], %s824_s13, %s824_s13, %s825_s14  }
   0x9   :  { %817 = dma.done.wait [#allocation3], 384  }
   0xa   :  { %818 = vsyncadd [#allocation3], 4294966912 }
   0xb   :  { %819 = dma.done.wait [#allocation6], 384  }
   0xc   :  { %820 = vsyncadd [#allocation6], 4294966912  ;;  %v72_v0 = vld [vmem:[#allocation5] sm:$0xff]  ;;  %v70_v1 = vld [vmem:[#allocation2] sm:$0xff]  ;;  %vm91_vm0 = vcmask 1043456   ;;  %vm87_vm1 = vcmask 64512  }
   0xd   :  { %v81_v2 = vunpack.c.l.b16 %v72_v0  ;;  %v82_v3 = vunpack.c.h.b16 %v72_v0  ;;  %v150_v4 = vunpack.c.l.b16 %v70_v1  ;;  %v73_v5 = vld [vmem:[#allocation5 + $0x8] sm:$0xf]  ;;  %v151_v6 = vunpack.c.h.b16 %v70_v1  ;;  %v71_v7 = vld [vmem:[#allocation2 + $0x8] sm:$0xf]  ;;  %v383_v50 = vld [vmem:[#allocation2 + $0xc] sm:$0xff]  ;;  %s668_s26 = sshll.u32 %s1031_s7, 4  ;;  %s669_s26 = int_to_ptr.hbm [resolvable:$true] %s668_s26 }
   0xe   :  { %v83_v8 = vunpack.c.l.b16 %v73_v5  ;;  %v152_v9 = vunpack.c.l.b16 %v71_v7  ;;  %v888_v19 = vld [vmem:[%s1027_s3] sm:$0xff]  ;;  %vm244_vm2 = vcmask 130048   ;;  %v449_v52 = vunpack.c.l.b16 %v383_v50  ;;  %v387_v5 = vld [vmem:[#allocation5 + $0x14] sm:$0xf]  ;;  %s829_s27 = smov 128   ;;  %s830_s28 = smov 8  }
   0xf   :  { %v84_v10 = vpack.c.b16 %v81_v2, %v81_v2  ;;  %v85_v11 = vpack.c.b16 %v82_v3, %v82_v3  ;;  %v153_v12 = vpack.c.b16 %v150_v4, %v150_v4  ;;  %v154_v13 = vpack.c.b16 %v151_v6, %v151_v6  ;;  %v894_v21 = vld [vmem:[%s1026_s2] sm:$0xff] }
  0x10   :  { %v86_v14 = vpack.c.b16 %v83_v8, %v83_v8  ;;  %v155_v15 = vpack.c.b16 %v152_v9, %v152_v9  ;;  %v912_v43 = vld [vmem:[#allocation5 + $0xc] sm:$0xff]  ;;  %v919_v49 = vld [vmem:[%s1028_s4] sm:$0xf]  ;;  %v452_v56 = vpack.c.b16 %v449_v52, %v449_v52  ;;  %v450_v4 = vunpack.c.h.b16 %v383_v50 }
  0x11   :  { %v93_v16 = vsel %vm91_vm0, %v84_v10, 0  ;;  %v96_v17 = vsel %vm91_vm0, %v85_v11, 0  ;;  %v160_v18 = vsel %vm91_vm0, %v153_v12, 0  ;;  %v163_v20 = vsel %vm91_vm0, %v154_v13, 0  ;;  %v69_v6 = vld [vmem:[%s1030_s6] sm:$0xf] }
  0x12   :  { %108 = vmatpush.bf16.msra.mxu0 %v93_v16  ;;  %122 = vmatpush.bf16.msra.mxu1 %v96_v17  ;;  %v99_v22 = vsel %vm91_vm0, %v86_v14, 0  ;;  %v166_v23 = vsel %vm91_vm0, %v155_v15, 0  ;;  %v390_v46 = vunpack.c.l.b16 %v912_v43  ;;  %v456_v59 = vsel %vm91_vm0, %v452_v56, 0  ;;  %v384_v15 = vld [vmem:[#allocation2 + $0x14] sm:$0xf] }
  0x13   :  { %175 = vmatpush.bf16.msra.mxu3 %v160_v18  ;;  %136 = vmatpush.bf16.msra.mxu2 %v99_v22  ;;  %v453_v8 = vpack.c.b16 %v450_v4, %v450_v4  ;;  %v392_v9 = vunpack.c.l.b16 %v387_v5  ;;  %v827_v10 = vmov 0   ;;  %v391_v18 = vunpack.c.h.b16 %v912_v43 }
  0x14   :  { %v393_v51 = vpack.c.b16 %v390_v46, %v390_v46  ;;  %728 = vset.pattern.permute.xlu0 %v827_v10 }
  0x15   :  { %690 = vmatmul.msk.bf16.vlgmr.msra.gmra.mxu0 %vm87_vm1, %v888_v19  ;;  %691 = vmatmul.msk.bf16.vlgmr.msra.gmra.mxu1 %vm87_vm1, %v888_v19  ;;  %v459_v13 = vsel %vm91_vm0, %v453_v8, 0  ;;  %v395_v14 = vpack.c.b16 %v392_v9, %v392_v9 }
  0x16   :  { %189 = vmatpush.bf16.msrb.mxu0 %v163_v20  ;;  %203 = vmatpush.bf16.msrb.mxu1 %v166_v23  ;;  %v397_v55 = vsel %vm91_vm0, %v393_v51, 0  ;;  %v451_v23 = vunpack.c.l.b16 %v384_v15 }
  0x17   :  { %697 = vmatmul.msk.bf16.vlgmr.msra.gmra.mxu3 %vm87_vm1, %v894_v21  ;;  %692 = vmatmul.msk.bf16.vlgmr.msra.gmra.mxu2 %vm87_vm1, %v888_v19  ;;  %v403_v17 = vsel %vm91_vm0, %v395_v14, 0 }
  0x18   :  { %277 = vperm.xlu0 %728, %v69_v6  }
  0x1a   :  { %412 = vmatpush.bf16.msra.mxu1 %v397_v55 }
  0x25   :  { %698 = vmatmul.msk.bf16.vlgmr.msrb.gmra.mxu0 %vm87_vm1, %v894_v21  ;;  %699 = vmatmul.msk.bf16.vlgmr.msrb.gmra.mxu1 %vm87_vm1, %v894_v21 }
  0x26   :  { %485 = vmatpush.bf16.msrb.mxu1 %v459_v13 }
  0x35   :  { %705 = vmatmul.msk.bf16.vlgmr.msra.gmra.mxu1 %vm87_vm1, %v888_v19 }
  0x45   :  { %709 = vmatmul.msk.bf16.vlgmr.msrb.gmra.mxu1 %vm87_vm1, %v894_v21 }
  0x92   :  { %v110_v24 = vpop.f32.mrf.mxu0  ;;  %v124_v25 = vpop.f32.mrf.mxu1 }
  0x9a   :  { %v177_v26 = vpop.f32.mrf.mxu3  ;;  %v112_v27 = vpop.f32.mrf.mxu0 }
  0x9b   :  { %v126_v28 = vpop.f32.mrf.mxu1  ;;  %v138_v29 = vpop.f32.mrf.mxu2  ;;  %v178_v30 = vadd.f32 %v177_v26, %v110_v24  ;;  %v394_v26 = vpack.c.b16 %v391_v18, %v391_v18 }
  0x9d   :  { %v210_v37 = vmul.f32 %v178_v30, %v178_v30 }
  0xa2   :  { %v179_v31 = vpop.f32.mrf.mxu3  ;;  %v191_v33 = vpop.f32.mrf.mxu0 }
  0xa3   :  { %v180_v32 = vadd.f32 %v179_v31, %v112_v27  ;;  %v205_v34 = vpop.f32.mrf.mxu1  ;;  %v192_v35 = vadd.f32 %v191_v33, %v124_v25  ;;  %v140_v42 = vpop.f32.mrf.mxu2 }
  0xa4   :  { %v206_v36 = vadd.f32 %v205_v34, %v138_v29  ;;  %v454_v29 = vpack.c.b16 %v451_v23, %v451_v23  ;;  %v400_v34 = vsel %vm91_vm0, %v394_v26, 0 }
  0xa5   :  { %327 = vmatpush.msrb.mxu3 %v180_v32  ;;  %v212_v38 = vmul.f32 %v192_v35, %v192_v35  ;;  %v211_v53 = vmul.f32 %v180_v32, %v180_v32  ;;  %v952_v32 = vld [vmem:[%s1029_s5] sm:$0xff] }
  0xa6   :  { %v216_v39 = vmul.f32 %v206_v36, %v206_v36 }
  0xa7   :  { %328 = vmatpush.msrb.mxu3 %v178_v30  ;;  %v214_v40 = vadd.f32 %v212_v38, %v210_v37 }
  0xa8   :  { %702 = vmatmul.msk.f32.vlgmr.msrb.gmra.mxu3 %vm244_vm2, %v919_v49 }
  0xa9   :  { %v910_v41 = vadd.f32 %v216_v39, %v214_v40 }
  0xaa   :  { %v193_v44 = vpop.f32.mrf.mxu0 }
  0xab   :  { %v207_v45 = vpop.f32.mrf.mxu1  ;;  %v194_v47 = vadd.f32 %v193_v44, %v126_v28  ;;  %729 = vrsqrt.f32 %v910_v41  ;;  %vm227_vm4 = vcmp.eq.f32.partialorder %v910_v41, inf  ;;  %v230_v31 = vand.u32 2147483648, %v910_v41 }
  0xac   :  { %v208_v48 = vadd.f32 %v207_v45, %v140_v42  ;;  %vm229_vm6 = vcmp.eq.f32.partialorder %v910_v41, 0.0  ;;  %v282_v45 = vlaneseq }
  0xad   :  { %v213_v54 = vmul.f32 %v194_v47, %v194_v47  ;;  %347 = vmatpush.msra.mxu3 %v194_v47 }
  0xae   :  { %367 = vmatpush.msra.mxu0 %v208_v48  ;;  %v217_v58 = vmul.f32 %v208_v48, %v208_v48  ;;  %v975_v46 = vand.u32 127, %v282_v45 }
  0xaf   :  { %v215_v57 = vadd.f32 %v213_v54, %v211_v53  ;;  %348 = vmatpush.msra.mxu3 %v192_v35  ;;  %v462_v35 = vsel %vm91_vm0, %v454_v29, 0 }
  0xb0   :  { %368 = vmatpush.msra.mxu0 %v206_v36  ;;  %703 = vmatmul.msk.f32.vlgmr.msra.gmra.mxu3 %vm244_vm2, %v919_v49  ;;  %v961_v36 = vld [vmem:[%s1029_s5 + $0x8] sm:$0xf]  ;;  %vm284_vm7 = vcmp.lt.s32.totalorder %v975_v46, 16  ;;  %s828_s5 = smov [#allocation7]  }
  0xb1   :  { %704 = vmatmul.msk.f32.vlgmr.msra.gmra.mxu0 %vm244_vm2, %v919_v49  ;;  %v730_v60 = vpop.eup %729  ;;  %v219_v61 = vadd.f32 %v217_v58, %v215_v57  ;;  %440 = vmatpush.bf16.msrb.mxu3 %v403_v17  ;;  %s666_s23 = sshll.u32 %s828_s5, 4  ;;  %s667_s23 = int_to_ptr.vmem [resolvable:$true] %s666_s23 }
  0xb2   :  { %471 = vmatpush.bf16.msrb.mxu0 %v456_v59  ;;  %v221_v62 = vmul.f32 %v730_v60, %v910_v41 }
  0xb3   :  { %731 = vrsqrt.f32 %v219_v61  ;;  %vm239_vm3 = vcmp.eq.f32.partialorder %v219_v61, inf  ;;  %v242_v25 = vand.u32 2147483648, %v219_v61  ;;  %vm241_vm5 = vcmp.eq.f32.partialorder %v219_v61, 0.0  ;;  %v414_v38 = vpop.f32.mrf.mxu1 }
  0xb4   :  { %v222_v63 = vmul.f32 %v730_v60, %v221_v62 }
  0xb6   :  { %v223_v0 = vmul.f32 0.5, %v222_v63 }
  0xb8   :  { %v224_v3 = vsub.f32 1.5, %v223_v0  ;;  %707 = vmatmul.msk.bf16.vlgmr.msrb.gmra.mxu3 %vm87_vm1, %v888_v19 }
  0xb9   :  { %708 = vmatmul.msk.bf16.vlgmr.msrb.gmra.mxu0 %vm87_vm1, %v894_v21  ;;  %v732_v1 = vpop.eup %731 }
  0xba   :  { %v233_v2 = vmul.f32 %v732_v1, %v219_v61  ;;  %v225_v12 = vmul.f32 %v730_v60, %v224_v3 }
  0xbb   :  { %v416_v40 = vpop.f32.mrf.mxu1 }
  0xbc   :  { %v234_v7 = vmul.f32 %v732_v1, %v233_v2  ;;  %v226_v22 = vmul.f32 %v225_v12, %v910_v41 }
  0xbe   :  { %v235_v11 = vmul.f32 0.5, %v234_v7  ;;  %v228_v28 = vsel %vm227_vm4, %v910_v41, %v226_v22 }
  0xbf   :  { %v231_v33 = vsel %vm229_vm6, %v230_v31, %v228_v28 }
  0xc0   :  { %v236_v16 = vsub.f32 1.5, %v235_v11 }
  0xc2   :  { %v237_v20 = vmul.f32 %v732_v1, %v236_v16 }
  0xc3   :  { %v487_v51 = vpop.f32.mrf.mxu1 }
  0xc4   :  { %v238_v24 = vmul.f32 %v237_v20, %v219_v61 }
  0xc6   :  { %v240_v27 = vsel %vm239_vm3, %v219_v61, %v238_v24 }
  0xc7   :  { %v243_v30 = vsel %vm241_vm5, %v242_v25, %v240_v27 }
  0xc8   :  { %265 = vmatpush.msrb.mxu2 %v243_v30 }
  0xca   :  { %266 = vmatpush.msrb.mxu2 %v231_v33 }
  0xcb   :  { %700 = vmatmul.msk.f32.vlgmr.msrb.gmra.mxu2 %vm244_vm2, %v952_v32  ;;  %v489_v56 = vpop.f32.mrf.mxu1 }
  0xcc   :  { %426 = vmatpush.bf16.msra.mxu2 %v400_v34 }
  0xd0   :  { %499 = vmatpush.bf16.msrb.mxu2 %v462_v35 }
  0xd3   :  { %701 = vmatmul.msk.f32.gmra.mxu2 %vm244_vm2, %v961_v36 }
  0xdb   :  { %706 = vmatmul.msk.bf16.vlgmr.msra.gmra.mxu2 %vm87_vm1, %v888_v19  ;;  %v973_v19 = vpop.permute.xlu0 %277 }
  0xeb   :  { %710 = vmatmul.msk.bf16.vlgmr.msrb.gmra.mxu2 %vm87_vm1, %v894_v21 }
 0x12b   :  { %v978_v48 = vpop.f32.mrf.mxu3 }
 0x12e   :  { %v969_v37 = vpop.f32.mrf.mxu0 }
 0x133   :  { %v987_v55 = vpop.f32.mrf.mxu3 }
 0x136   :  { %v473_v39 = vpop.f32.mrf.mxu0 }
 0x137   :  { %v474_v42 = vadd.f32 %v473_v39, %v414_v38 }
 0x139   :  { %v506_v63 = vmul.f32 %v474_v42, %v474_v42 }
 0x13b   :  { %v442_v60 = vpop.f32.mrf.mxu3 }
 0x13e   :  { %v475_v41 = vpop.f32.mrf.mxu0 }
 0x13f   :  { %v476_v43 = vadd.f32 %v475_v41, %v416_v40 }
 0x141   :  { %606 = vmatpush.msra.mxu0 %v476_v43  ;;  %v507_v7 = vmul.f32 %v476_v43, %v476_v43 }
 0x143   :  { %607 = vmatpush.msra.mxu0 %v474_v42  ;;  %v444_v5 = vpop.f32.mrf.mxu3 }
 0x144   :  { %713 = vmatmul.msk.f32.vlgmr.msra.gmra.mxu0 %vm244_vm2, %v919_v49 }
 0x14e   :  { %v268_v44 = vpop.f32.mrf.mxu2 }
 0x14f   :  { %274 = vst [vmem:[#allocation7] sm:$0xff] %v268_v44 }
 0x156   :  { %v271_v21 = vpop.f32.mrf.mxu2 }
 0x157   :  { %v280_v47 = vadd.f32 %v973_v19, %v271_v21 }
 0x159   :  { %v281_v50 = vmul.f32 0.35355338, %v280_v47 }
 0x15b   :  { %v983_v52 = vsel %vm284_vm7, %v281_v50, -1e+30 }
 0x15c   :  { %v286_v53 = vsel %vm91_vm0, %v983_v52, -inf }
 0x15d   :  { %287 = vmax.xlane.f32.xlu0 %v286_v53 }
 0x15e   :  { %v428_v54 = vpop.f32.mrf.mxu2 }
 0x15f   :  { %v488_v59 = vadd.f32 %v487_v51, %v428_v54 }
 0x161   :  { %v508_v61 = vmul.f32 %v488_v59, %v488_v59 }
 0x163   :  { %v510_v1 = vadd.f32 %v508_v61, %v506_v63 }
 0x166   :  { %v430_v57 = vpop.f32.mrf.mxu2 }
 0x167   :  { %v490_v58 = vadd.f32 %v489_v56, %v430_v57 }
 0x169   :  { %626 = vmatpush.msrb.mxu0 %v490_v58  ;;  %v509_v4 = vmul.f32 %v490_v58, %v490_v58 }
 0x16b   :  { %627 = vmatpush.msrb.mxu0 %v488_v59  ;;  %v511_v9 = vadd.f32 %v509_v4, %v507_v7 }
 0x16c   :  { %714 = vmatmul.msk.f32.vlgmr.msrb.gmra.mxu0 %vm244_vm2, %v919_v49 }
 0x16e   :  { %v501_v62 = vpop.f32.mrf.mxu2 }
 0x16f   :  { %v502_v0 = vadd.f32 %v501_v62, %v442_v60 }
 0x171   :  { %v512_v2 = vmul.f32 %v502_v0, %v502_v0 }
 0x173   :  { %v514_v3 = vadd.f32 %v512_v2, %v510_v1 }
 0x175   :  { %733 = vrsqrt.f32 %v514_v3  ;;  %vm523_vm9 = vcmp.eq.f32.partialorder %v514_v3, inf  ;;  %v526_v31 = vand.u32 2147483648, %v514_v3  ;;  %vm525_vm11 = vcmp.eq.f32.partialorder %v514_v3, 0.0 }
 0x176   :  { %v503_v6 = vpop.f32.mrf.mxu2 }
 0x177   :  { %v504_v8 = vadd.f32 %v503_v6, %v444_v5 }
 0x179   :  { %v513_v10 = vmul.f32 %v504_v8, %v504_v8  ;;  %646 = vmatpush.msra.mxu1 %v504_v8 }
 0x17b   :  { %v734_v11 = vpop.eup %733  ;;  %v515_v12 = vadd.f32 %v513_v10, %v511_v9  ;;  %647 = vmatpush.msra.mxu1 %v502_v0 }
 0x17c   :  { %v517_v13 = vmul.f32 %v734_v11, %v514_v3  ;;  %715 = vmatmul.msk.f32.vlgmr.msra.gmra.mxu1 %vm244_vm2, %v919_v49 }
 0x17d   :  { %735 = vrsqrt.f32 %v515_v12  ;;  %vm535_vm8 = vcmp.eq.f32.partialorder %v515_v12, inf  ;;  %v538_v28 = vand.u32 2147483648, %v515_v12  ;;  %vm537_vm10 = vcmp.eq.f32.partialorder %v515_v12, 0.0 }
 0x17e   :  { %v518_v14 = vmul.f32 %v734_v11, %v517_v13 }
 0x180   :  { %v519_v15 = vmul.f32 0.5, %v518_v14 }
 0x182   :  { %v520_v18 = vsub.f32 1.5, %v519_v15 }
 0x183   :  { %v736_v16 = vpop.eup %735 }
 0x184   :  { %v529_v17 = vmul.f32 %v736_v16, %v515_v12  ;;  %v521_v23 = vmul.f32 %v734_v11, %v520_v18 }
 0x186   :  { %v530_v20 = vmul.f32 %v736_v16, %v529_v17  ;;  %v522_v26 = vmul.f32 %v521_v23, %v514_v3 }
 0x188   :  { %v531_v22 = vmul.f32 0.5, %v530_v20  ;;  %v524_v30 = vsel %vm523_vm9, %v514_v3, %v522_v26 }
 0x189   :  { %v527_v33 = vsel %vm525_vm11, %v526_v31, %v524_v30 }
 0x18a   :  { %v532_v24 = vsub.f32 1.5, %v531_v22 }
 0x18c   :  { %v533_v25 = vmul.f32 %v736_v16, %v532_v24 }
 0x18e   :  { %v534_v27 = vmul.f32 %v533_v25, %v515_v12 }
 0x190   :  { %v536_v29 = vsel %vm535_vm8, %v515_v12, %v534_v27 }
 0x191   :  { %v539_v49 = vsel %vm537_vm10, %v538_v28, %v536_v29 }
 0x192   :  { %554 = vmatpush.msra.mxu3 %v539_v49 }
 0x194   :  { %555 = vmatpush.msra.mxu3 %v527_v33 }
 0x195   :  { %711 = vmatmul.msk.f32.vlgmr.msra.gmra.mxu3 %vm244_vm2, %v952_v32 }
 0x19d   :  { %712 = vmatmul.msk.f32.gmra.mxu3 %vm244_vm2, %v961_v36 }
 0x1c1   :  { %v609_v6 = vpop.f32.mrf.mxu0 }
 0x1d0   :  { %v288_v35 = vpop.xlane.xlu0 %287 }
 0x1d1   :  { %v289_v38 = vsub.f32 %v983_v52, %v288_v35 }
 0x1d3   :  { %v290_v40 = vmul.f32 1.442695, %v289_v38 }
 0x1d5   :  { %737 = vpow2.f32 %v290_v40 }
 0x1db   :  { %v738_v32 = vpop.eup %737 }
 0x1dc   :  { %v292_v36 = vsel %vm91_vm0, %v738_v32, 0.0 }
 0x1e9   :  { %v629_v13 = vpop.f32.mrf.mxu0 }
 0x1f9   :  { %v649_v14 = vpop.f32.mrf.mxu1 }
 0x218   :  { %v557_v34 = vpop.f32.mrf.mxu3 }
 0x219   :  { %564 = vst [vmem:[#allocation7 + $0x8] sm:$0xff] %v557_v34 }
 0x21a   :  { %674 = dma.vmem_to_hbm [thread:$0]  %s667_s23, 256, %s669_s26, [#allocation4], %s829_s27, %s829_s27, %s830_s28  }
 0x220   :  { %v560_v39 = vpop.f32.mrf.mxu3 }
 0x221   :  { %v565_v41 = vadd.f32 %v560_v39, %v973_v19 }
 0x223   :  { %v566_v42 = vmul.f32 0.35355338, %v565_v41 }
 0x225   :  { %v567_v43 = vsel %vm284_vm7, %v566_v42, -1e+30 }
 0x226   :  { %v568_v44 = vsel %vm91_vm0, %v567_v43, -inf }
 0x227   :  { %569 = vmax.xlane.f32.xlu1 %v568_v44 }
 0x22f   :  { %293 = vadd.xlane.f32.xlu1 %v292_v36 }
 0x29a   :  { %v570_v45 = vpop.xlane.xlu1 %569 }
 0x29b   :  { %v571_v21 = vsub.f32 %v567_v43, %v570_v45 }
 0x29d   :  { %v572_v47 = vmul.f32 1.442695, %v571_v21 }
 0x29f   :  { %739 = vpow2.f32 %v572_v47 }
 0x2a2   :  { %v294_v50 = vpop.xlane.xlu1 %293 }
 0x2a3   :  { %741 = vrcp.f32 %v294_v50  ;;  %v306_v54 = vand.u32 2147483648, %v294_v50  ;;  %v304_v57 = vand.u32 2147483647, %v294_v50  ;;  %vm300_vm13 = vweird.f32 %v294_v50 }
 0x2a5   :  { %v740_v51 = vpop.eup %739  ;;  %v307_v59 = vor.u32 1.1754944e-38, %v306_v54  ;;  %vm305_vm15 = vcmp.eq.f32.partialorder %v304_v57, 8.507059e+37 }
 0x2a6   :  { %v574_v19 = vsel %vm91_vm0, %v740_v51, 0.0 }
 0x2a7   :  { %575 = vadd.xlane.f32.xlu2 %v574_v19 }
 0x2a9   :  { %v742_v52 = vpop.eup %741 }
 0x2aa   :  { %v296_v46 = vmul.f32 %v742_v52, %v294_v50  ;;  %vm301_vm12 = vweird.f32 %v742_v52 }
 0x2ab   :  { %vm302_vm14 = vmor %vm300_vm13, %vm301_vm12 }
 0x2ac   :  { %v297_v53 = vsub.f32 1.0, %v296_v46 }
 0x2ae   :  { %v298_v56 = vmul.f32 %v742_v52, %v297_v53 }
 0x2b0   :  { %v299_v58 = vadd.f32 %v742_v52, %v298_v56 }
 0x2b2   :  { %v303_v60 = vsel %vm302_vm14, %v742_v52, %v299_v58 }
 0x2b3   :  { %v308_v61 = vsel %vm305_vm15, %v307_v59, %v303_v60 }
 0x2b4   :  { %v309_v62 = vmul.f32 %v738_v32, %v308_v61 }
 0x2b6   :  { %v374_v63 = vmul.f32 %v987_v55, %v309_v62  ;;  %v375_v0 = vmul.f32 %v969_v37, %v309_v62  ;;  %v373_v1 = vmul.f32 %v978_v48, %v309_v62 }
 0x2b8   :  { %v377_v2 = vrot.slane %v374_v63, 4  ;;  %381 = vst [vmem:[%s1032_s8 + $0x8] sm:$0xf] %v375_v0 }
 0x2ba   :  { %v379_v3 = vsel %vm91_vm0, %v373_v1, %v377_v2 }
 0x2bb   :  { %380 = vst [vmem:[%s1032_s8] sm:$0xff] %v379_v3 }
 0x31a   :  { %v576_v4 = vpop.xlane.xlu2 %575 }
 0x31b   :  { %743 = vrcp.f32 %v576_v4  ;;  %v588_v37 = vand.u32 2147483648, %v576_v4  ;;  %v586_v48 = vand.u32 2147483647, %v576_v4  ;;  %vm582_vm2 = vweird.f32 %v576_v4 }
 0x31d   :  { %v589_v10 = vor.u32 1.1754944e-38, %v588_v37  ;;  %vm587_vm4 = vcmp.eq.f32.partialorder %v586_v48, 8.507059e+37 }
 0x321   :  { %v744_v5 = vpop.eup %743 }
 0x322   :  { %v578_v55 = vmul.f32 %v744_v5, %v576_v4  ;;  %vm583_vm1 = vweird.f32 %v744_v5 }
 0x323   :  { %vm584_vm3 = vmor %vm582_vm2, %vm583_vm1 }
 0x324   :  { %v579_v7 = vsub.f32 1.0, %v578_v55 }
 0x326   :  { %v580_v8 = vmul.f32 %v744_v5, %v579_v7 }
 0x328   :  { %v581_v9 = vadd.f32 %v744_v5, %v580_v8 }
 0x32a   :  { %v585_v11 = vsel %vm584_vm3, %v744_v5, %v581_v9 }
 0x32b   :  { %v590_v12 = vsel %vm587_vm4, %v589_v10, %v585_v11 }
 0x32c   :  { %v591_v15 = vmul.f32 %v740_v51, %v590_v12 }
 0x32e   :  { %v653_v16 = vmul.f32 %v629_v13, %v591_v15  ;;  %v654_v17 = vmul.f32 %v649_v14, %v591_v15  ;;  %v652_v18 = vmul.f32 %v609_v6, %v591_v15 }
 0x330   :  { %v656_v20 = vrot.slane %v653_v16, 4  ;;  %717 = vst [vmem:[%s1032_s8 + $0x18] sm:$0xf] %v654_v17 }
 0x332   :  { %v658_v22 = vsel %vm91_vm0, %v652_v18, %v656_v20 }
 0x333   :  { %716 = vst [vmem:[%s1032_s8 + $0x10] sm:$0xff] %v658_v22 }
 0x334   :  { %821 = dma.done.wait [#allocation4], 256  }
 0x335   :  { %822 = vsyncadd [#allocation4], 4294967040 }
 0x336   :  { %683 = vsyncpa [#allocation3], 1 }
 0x337   :  { %684 = vsyncpa [#allocation6], 1 }
 0x338   :  { %685 = vsyncpa [#allocation4], 1 }

</bundles_post_ra>
